<compile_context>
chip_gen: v6e
topology: v6e:2x2x1
jax: 0.10.0
libtpu: 0.0.40
codegen_flags: <defaults>
</compile_context>

<pallas_src>
import functools
import math

import jax
import jax.numpy as jnp
from jax.experimental import pallas as pl
from jax.experimental.pallas import tpu as pltpu

NUM_EXPERTS = 5  # routing() hard-codes 5 expert branches


# ----------------------------- Pallas kernel ------------------------------ #
def _conv_mish_kernel(x_ref, w_ref, o_ref, patch_ref, *, K, Wp, Lout):
    # x_ref    : (NB, Cp, Lin)      channel-padded, spatially padded, flattened
    # w_ref    : (NB, Co, K*K*Cp)   per-sample mixed kernel, rows = (kh, kw, ci)
    # o_ref    : (NB, Co, Lout)     Lout = H * Wp (padded-W-stride flat output)
    # patch_ref: (K*K*Cp, Lout)     im2col scratch (VMEM)
    NB, Cp = x_ref.shape[0], x_ref.shape[1]

    for s in range(NB):                      # NB is small & static
        # --- im2col: each tap is a pure lane-shift slice of the flat image ---
        for kh in range(K):
            for kw in range(K):
                tap = kh * K + kw
                off = kh * Wp + kw           # static lane offset of this tap
                patch_ref[tap * Cp:(tap + 1) * Cp, :] = (
                    x_ref[s, :, off:off + Lout])

        # --- single MXU matmul: (Co, K*K*Cp) x (K*K*Cp, Lout) -> (Co, Lout) --
        acc = jnp.dot(w_ref[s], patch_ref[...],
                      preferred_element_type=jnp.float32)

        # --- Mish epilogue: y * tanh(softplus(y)), softplus threshold=20 ---
        # tanh(log1p(e^y)) == 1 - 2 / ((1 + e^y)^2 + 1)  -> 1 exp + 1 vrcp.
        e = jnp.exp(jnp.minimum(acc, 20.0))
        p = 1.0 + e
        tanh_sp = 1.0 - 2.0 * pl.reciprocal(p * p + 1.0, approx=True)
        y = jnp.where(acc > 20.0, acc, acc * tanh_sp)
        o_ref[s] = y.astype(o_ref.dtype)


def _pallas_conv_mish(xf, wk, H, Wp, K, samples_per_block=1):
    # xf: (N, Cp, Lin) flattened padded NCHW; wk: (N, Co, K*K*Cp)
    # returns (N, Co, H*Wp)
    N, Cp, Lin = xf.shape
    Co, KKC = wk.shape[1], wk.shape[2]
    Lout = H * Wp
    nb = samples_per_block
    assert N % nb == 0, "batch must be divisible by samples_per_block"

    # VMEM budget: double-buffered in/out blocks + im2col scratch (+ slack).
    blk_bytes = 4 * nb * (Cp * Lin + Co * KKC + Co * Lout)
    scratch_bytes = 4 * KKC * Lout
    vmem_limit = int(min(48 << 20,
                         max(8 << 20, 4 * (2 * blk_bytes + scratch_bytes))))
    # TODO(synk): for production frames (e.g. 256x256x64) add an H-tile grid
    # axis with a (K-1)-row halo so blocks stay under v7x's 64 MiB VMEM.

    kernel = functools.partial(_conv_mish_kernel, K=K, Wp=Wp, Lout=Lout)
    return pl.pallas_call(
        kernel,
        out_shape=jax.ShapeDtypeStruct((N, Co, Lout), jnp.float32),
        grid=(N // nb,),
        in_specs=[
            pl.BlockSpec((nb, Cp, Lin), lambda n: (n, 0, 0)),
            pl.BlockSpec((nb, Co, KKC), lambda n: (n, 0, 0)),
        ],
        out_specs=pl.BlockSpec((nb, Co, Lout), lambda n: (n, 0, 0)),
        scratch_shapes=[pltpu.VMEM((KKC, Lout), jnp.float32)],
        compiler_params=pltpu.CompilerParams(
            dimension_semantics=("parallel",),
            vmem_limit_bytes=vmem_limit),
    )(xf, wk)


# ------------------------- parameter construction ------------------------- #
def _kaiming_uniform_fan_out(key, co, ci, k):
    # kaiming_uniform_(a=sqrt(5), mode='fan_out')
    fan_out = co * k * k
    gain = math.sqrt(2.0 / (1.0 + 5.0))
    bound = gain * math.sqrt(3.0 / fan_out)
    return jax.random.uniform(key, (co, ci, k, k), jnp.float32, -bound, bound)


def init_mode_conv2d_params(key, num_tasks, in_chan, out_chan):
    k = jax.random.split(key, 7)
    lin_bound = 1.0 / math.sqrt(num_tasks)
    return dict(
        conv5=_kaiming_uniform_fan_out(k[0], out_chan, in_chan, 5),
        conv3=_kaiming_uniform_fan_out(k[1], out_chan, in_chan, 3),
        conv1=_kaiming_uniform_fan_out(k[2], out_chan, in_chan, 1),
        avg3_conv=_kaiming_uniform_fan_out(k[3], out_chan, in_chan, 1),
        avg5_conv=_kaiming_uniform_fan_out(k[4], out_chan, in_chan, 1),
        gate_w=jax.random.uniform(k[5], (NUM_EXPERTS * out_chan, num_tasks),
                                  jnp.float32, -lin_bound, lin_bound),
        gate_b=jax.random.uniform(k[6], (NUM_EXPERTS * out_chan,),
                                  jnp.float32, -lin_bound, lin_bound),
    )


def _pad_center(kernel, target):
    ph = (target - kernel.shape[2]) // 2
    pw = (target - kernel.shape[3]) // 2
    return jnp.pad(kernel, ((0, 0), (0, 0), (ph, ph), (pw, pw)))


def _expert_bank(params, K=5):
    pool3 = jnp.full((3, 3), 1.0 / 9.0, jnp.float32)
    pool5 = jnp.full((5, 5), 1.0 / 25.0, jnp.float32)
    e0 = params["conv5"]
    e1 = _pad_center(params["conv3"], K)
    e2 = _pad_center(params["conv1"], K)
    e3 = _pad_center(params["avg3_conv"] * pool3[None, None], K)
    e4 = params["avg5_conv"] * pool5[None, None]
    return jnp.stack([e0, e1, e2, e3, e4], axis=0)  # (E, Co, Ci, K, K)


# -------------------------------- forward --------------------------------- #
def mode_conv2d_forward(params, x, t, out_chan, samples_per_block=1):
    # x: (N, Ci, H, W) NCHW (torch convention), t: (N, num_tasks)
    N, Ci, H, W = x.shape
    # gate -> softmax over experts (tiny XLA glue)
    g = t @ params["gate_w"].T + params["gate_b"]
    g = jax.nn.softmax(g.reshape(N, NUM_EXPERTS, out_chan), axis=1)
    # routing: per-sample weight (N, Co, Ci, K, K)
    bank = _expert_bank(params)
    w = jnp.einsum("eoihw,neo->noihw", bank, g)

    K = bank.shape[-1]
    P = (K - 1) // 2
    Hp, Wp = H + 2 * P, W + 2 * P
    Cp = ((Ci + 7) // 8) * 8                 # channel dim -> sublane multiple
    Lout = H * Wp                            # padded-W-stride output length
    Lin = ((2 * P * Wp + 2 * P + Lout + 127) // 128) * 128   # lane-padded

    # channel pad -> spatial 'same' pad -> flatten -> lane pad (all tiny XLA).
    xc = jnp.pad(x, ((0, 0), (0, Cp - Ci), (0, 0), (0, 0)))
    xp = jnp.pad(xc, ((0, 0), (0, 0), (P, P), (P, P)))
    xf = xp.reshape(N, Cp, Hp * Wp)
    xf = jnp.pad(xf, ((0, 0), (0, 0), (0, Lin - Hp * Wp)))

    # weight rows must match the im2col ordering (kh, kw, ci) with ci -> Cp.
    wk = jnp.transpose(w, (0, 1, 3, 4, 2))                    # (N,Co,K,K,Ci)
    wk = jnp.pad(wk, ((0, 0), (0, 0), (0, 0), (0, 0), (0, Cp - Ci)))
    wk = wk.reshape(N, out_chan, K * K * Cp)

    y = _pallas_conv_mish(xf, wk, H, Wp, K, samples_per_block)  # (N,Co,H*Wp)
    # trim the W-stride padding columns (cheap XLA slice) -> native NCHW.
    return y.reshape(N, out_chan, H, Wp)[..., :W]


# --------------------------- pure-JAX reference ---------------------------- #
def _reference_forward(params, x, t, out_chan):
    N = x.shape[0]
    g = t @ params["gate_w"].T + params["gate_b"]
    g = jax.nn.softmax(g.reshape(N, NUM_EXPERTS, out_chan), axis=1)
    w = jnp.einsum("eoihw,neo->noihw", _expert_bank(params), g)
    ys = []
    for i in range(N):
        ys.append(jax.lax.conv_general_dilated(
            x[i:i + 1], w[i], window_strides=(1, 1), padding="SAME",
            dimension_numbers=("NCHW", "OIHW", "NCHW")))
    y = jnp.concatenate(ys, axis=0)
    return y * jnp.tanh(jax.nn.softplus(y))


# ---------------------------------- main ----------------------------------- #
if __name__ == "__main__":
    N, num_tasks, in_chan, out_chan, H, W = 2, 8, 4, 4, 16, 16

    root = jax.random.PRNGKey(0)
    kp, kx, kt = jax.random.split(root, 3)
    params = init_mode_conv2d_params(kp, num_tasks, in_chan, out_chan)
    x = jax.random.normal(kx, (N, in_chan, H, W), jnp.float32)
    t = jax.random.normal(kt, (N, num_tasks), jnp.float32)

    y_ref = jax.block_until_ready(_reference_forward(params, x, t, out_chan))

    # One sample per grid step: 2 parallel steps (keeps both v7x TCs busy).
    y1 = jax.block_until_ready(
        mode_conv2d_forward(params, x, t, out_chan, samples_per_block=1))
    assert y1.shape == (N, out_chan, H, W)
    # approx reciprocal in the Mish epilogue -> slightly loosened tolerance
    assert bool(jnp.allclose(y1, y_ref, atol=2e-3, rtol=2e-3)), "mismatch (nb=1)"

    # Whole batch in a single grid step (amortized path).
    y2 = jax.block_until_ready(
        mode_conv2d_forward(params, x, t, out_chan, samples_per_block=2))
    assert bool(jnp.allclose(y2, y_ref, atol=2e-3, rtol=2e-3)), "mismatch (nb=2)"

    print("KERNEL_OK")
</pallas_src>

<mosaic_0001>
module attributes {stable_mosaic.version = 11 : i64} {
  func.func @_conv_mish_kernel(%arg0: i32, %arg1: memref<1x8x512xf32, #tpu.memory_space<vmem>>, %arg2: memref<1x4x200xf32, #tpu.memory_space<vmem>>, %arg3: memref<1x4x320xf32, #tpu.memory_space<vmem>>, %arg4: memref<200x320xf32, #tpu.memory_space<vmem>>) attributes {dimension_semantics = [#tpu.dimension_semantics<parallel>], iteration_bounds = array<i64: 2>, scalar_prefetch = 0 : i64, scratch_operands = 1 : i64, tpu.core_type = #tpu.core_type<tc>, window_params = [{transform_indices = @transform_0, window_bounds = array<i64: 1, 8, 512>}, {transform_indices = @transform_1, window_bounds = array<i64: 1, 4, 200>}, {transform_indices = @transform_2, window_bounds = array<i64: 1, 4, 320>}]} {
    %c0 = arith.constant 0 : index
    %c0_0 = arith.constant 0 : index
    %c0_1 = arith.constant 0 : index
    %0 = vector.load %arg1[%c0, %c0_0, %c0_1] : memref<1x8x512xf32, #tpu.memory_space<vmem>>, vector<1x8x320xf32>
    %1 = vector.shape_cast %0 : vector<1x8x320xf32> to vector<8x320xf32>
    %c0_2 = arith.constant 0 : index
    %c0_3 = arith.constant 0 : index
    %2 = vector.load %arg4[%c0_2, %c0_3] : memref<200x320xf32, #tpu.memory_space<vmem>>, vector<8x320xf32>
    tpu.vector_store %arg4[%c0_2, %c0_3], %1 {strides = array<i32>} : memref<200x320xf32, #tpu.memory_space<vmem>>, vector<8x320xf32>,
    %c0_4 = arith.constant 0 : index
    %c0_5 = arith.constant 0 : index
    %c1 = arith.constant 1 : index
    %3 = vector.load %arg1[%c0_4, %c0_5, %c1] : memref<1x8x512xf32, #tpu.memory_space<vmem>>, vector<1x8x320xf32>
    %4 = vector.shape_cast %3 : vector<1x8x320xf32> to vector<8x320xf32>
    %c8 = arith.constant 8 : index
    %c0_6 = arith.constant 0 : index
    %5 = vector.load %arg4[%c8, %c0_6] : memref<200x320xf32, #tpu.memory_space<vmem>>, vector<8x320xf32>
    tpu.vector_store %arg4[%c8, %c0_6], %4 {strides = array<i32>} : memref<200x320xf32, #tpu.memory_space<vmem>>, vector<8x320xf32>,
    %c0_7 = arith.constant 0 : index
    %c0_8 = arith.constant 0 : index
    %c2 = arith.constant 2 : index
    %6 = vector.load %arg1[%c0_7, %c0_8, %c2] : memref<1x8x512xf32, #tpu.memory_space<vmem>>, vector<1x8x320xf32>
    %7 = vector.shape_cast %6 : vector<1x8x320xf32> to vector<8x320xf32>
    %c16 = arith.constant 16 : index
    %c0_9 = arith.constant 0 : index
    %8 = vector.load %arg4[%c16, %c0_9] : memref<200x320xf32, #tpu.memory_space<vmem>>, vector<8x320xf32>
    tpu.vector_store %arg4[%c16, %c0_9], %7 {strides = array<i32>} : memref<200x320xf32, #tpu.memory_space<vmem>>, vector<8x320xf32>,
    %c0_10 = arith.constant 0 : index
    %c0_11 = arith.constant 0 : index
    %c3 = arith.constant 3 : index
    %9 = vector.load %arg1[%c0_10, %c0_11, %c3] : memref<1x8x512xf32, #tpu.memory_space<vmem>>, vector<1x8x320xf32>
    %10 = vector.shape_cast %9 : vector<1x8x320xf32> to vector<8x320xf32>
    %c24 = arith.constant 24 : index
    %c0_12 = arith.constant 0 : index
    %11 = vector.load %arg4[%c24, %c0_12] : memref<200x320xf32, #tpu.memory_space<vmem>>, vector<8x320xf32>
    tpu.vector_store %arg4[%c24, %c0_12], %10 {strides = array<i32>} : memref<200x320xf32, #tpu.memory_space<vmem>>, vector<8x320xf32>,
    %c0_13 = arith.constant 0 : index
    %c0_14 = arith.constant 0 : index
    %c4 = arith.constant 4 : index
    %12 = vector.load %arg1[%c0_13, %c0_14, %c4] : memref<1x8x512xf32, #tpu.memory_space<vmem>>, vector<1x8x320xf32>
    %13 = vector.shape_cast %12 : vector<1x8x320xf32> to vector<8x320xf32>
    %c32 = arith.constant 32 : index
    %c0_15 = arith.constant 0 : index
    %14 = vector.load %arg4[%c32, %c0_15] : memref<200x320xf32, #tpu.memory_space<vmem>>, vector<8x320xf32>
    tpu.vector_store %arg4[%c32, %c0_15], %13 {strides = array<i32>} : memref<200x320xf32, #tpu.memory_space<vmem>>, vector<8x320xf32>,
    %c0_16 = arith.constant 0 : index
    %c0_17 = arith.constant 0 : index
    %c20 = arith.constant 20 : index
    %15 = vector.load %arg1[%c0_16, %c0_17, %c20] : memref<1x8x512xf32, #tpu.memory_space<vmem>>, vector<1x8x320xf32>
    %16 = vector.shape_cast %15 : vector<1x8x320xf32> to vector<8x320xf32>
    %c40 = arith.constant 40 : index
    %c0_18 = arith.constant 0 : index
    %17 = vector.load %arg4[%c40, %c0_18] : memref<200x320xf32, #tpu.memory_space<vmem>>, vector<8x320xf32>
    tpu.vector_store %arg4[%c40, %c0_18], %16 {strides = array<i32>} : memref<200x320xf32, #tpu.memory_space<vmem>>, vector<8x320xf32>,
    %c0_19 = arith.constant 0 : index
    %c0_20 = arith.constant 0 : index
    %c21 = arith.constant 21 : index
    %18 = vector.load %arg1[%c0_19, %c0_20, %c21] : memref<1x8x512xf32, #tpu.memory_space<vmem>>, vector<1x8x320xf32>
    %19 = vector.shape_cast %18 : vector<1x8x320xf32> to vector<8x320xf32>
    %c48 = arith.constant 48 : index
    %c0_21 = arith.constant 0 : index
    %20 = vector.load %arg4[%c48, %c0_21] : memref<200x320xf32, #tpu.memory_space<vmem>>, vector<8x320xf32>
    tpu.vector_store %arg4[%c48, %c0_21], %19 {strides = array<i32>} : memref<200x320xf32, #tpu.memory_space<vmem>>, vector<8x320xf32>,
    %c0_22 = arith.constant 0 : index
    %c0_23 = arith.constant 0 : index
    %c22 = arith.constant 22 : index
    %21 = vector.load %arg1[%c0_22, %c0_23, %c22] : memref<1x8x512xf32, #tpu.memory_space<vmem>>, vector<1x8x320xf32>
    %22 = vector.shape_cast %21 : vector<1x8x320xf32> to vector<8x320xf32>
    %c56 = arith.constant 56 : index
    %c0_24 = arith.constant 0 : index
    %23 = vector.load %arg4[%c56, %c0_24] : memref<200x320xf32, #tpu.memory_space<vmem>>, vector<8x320xf32>
    tpu.vector_store %arg4[%c56, %c0_24], %22 {strides = array<i32>} : memref<200x320xf32, #tpu.memory_space<vmem>>, vector<8x320xf32>,
    %c0_25 = arith.constant 0 : index
    %c0_26 = arith.constant 0 : index
    %c23 = arith.constant 23 : index
    %24 = vector.load %arg1[%c0_25, %c0_26, %c23] : memref<1x8x512xf32, #tpu.memory_space<vmem>>, vector<1x8x320xf32>
    %25 = vector.shape_cast %24 : vector<1x8x320xf32> to vector<8x320xf32>
    %c64 = arith.constant 64 : index
    %c0_27 = arith.constant 0 : index
    %26 = vector.load %arg4[%c64, %c0_27] : memref<200x320xf32, #tpu.memory_space<vmem>>, vector<8x320xf32>
    tpu.vector_store %arg4[%c64, %c0_27], %25 {strides = array<i32>} : memref<200x320xf32, #tpu.memory_space<vmem>>, vector<8x320xf32>,
    %c0_28 = arith.constant 0 : index
    %c0_29 = arith.constant 0 : index
    %c24_30 = arith.constant 24 : index
    %27 = vector.load %arg1[%c0_28, %c0_29, %c24_30] : memref<1x8x512xf32, #tpu.memory_space<vmem>>, vector<1x8x320xf32>
    %28 = vector.shape_cast %27 : vector<1x8x320xf32> to vector<8x320xf32>
    %c72 = arith.constant 72 : index
    %c0_31 = arith.constant 0 : index
    %29 = vector.load %arg4[%c72, %c0_31] : memref<200x320xf32, #tpu.memory_space<vmem>>, vector<8x320xf32>
    tpu.vector_store %arg4[%c72, %c0_31], %28 {strides = array<i32>} : memref<200x320xf32, #tpu.memory_space<vmem>>, vector<8x320xf32>,
    %c0_32 = arith.constant 0 : index
    %c0_33 = arith.constant 0 : index
    %c40_34 = arith.constant 40 : index
    %30 = vector.load %arg1[%c0_32, %c0_33, %c40_34] : memref<1x8x512xf32, #tpu.memory_space<vmem>>, vector<1x8x320xf32>
    %31 = vector.shape_cast %30 : vector<1x8x320xf32> to vector<8x320xf32>
    %c80 = arith.constant 80 : index
    %c0_35 = arith.constant 0 : index
    %32 = vector.load %arg4[%c80, %c0_35] : memref<200x320xf32, #tpu.memory_space<vmem>>, vector<8x320xf32>
    tpu.vector_store %arg4[%c80, %c0_35], %31 {strides = array<i32>} : memref<200x320xf32, #tpu.memory_space<vmem>>, vector<8x320xf32>,
    %c0_36 = arith.constant 0 : index
    %c0_37 = arith.constant 0 : index
    %c41 = arith.constant 41 : index
    %33 = vector.load %arg1[%c0_36, %c0_37, %c41] : memref<1x8x512xf32, #tpu.memory_space<vmem>>, vector<1x8x320xf32>
    %34 = vector.shape_cast %33 : vector<1x8x320xf32> to vector<8x320xf32>
    %c88 = arith.constant 88 : index
    %c0_38 = arith.constant 0 : index
    %35 = vector.load %arg4[%c88, %c0_38] : memref<200x320xf32, #tpu.memory_space<vmem>>, vector<8x320xf32>
    tpu.vector_store %arg4[%c88, %c0_38], %34 {strides = array<i32>} : memref<200x320xf32, #tpu.memory_space<vmem>>, vector<8x320xf32>,
    %c0_39 = arith.constant 0 : index
    %c0_40 = arith.constant 0 : index
    %c42 = arith.constant 42 : index
    %36 = vector.load %arg1[%c0_39, %c0_40, %c42] : memref<1x8x512xf32, #tpu.memory_space<vmem>>, vector<1x8x320xf32>
    %37 = vector.shape_cast %36 : vector<1x8x320xf32> to vector<8x320xf32>
    %c96 = arith.constant 96 : index
    %c0_41 = arith.constant 0 : index
    %38 = vector.load %arg4[%c96, %c0_41] : memref<200x320xf32, #tpu.memory_space<vmem>>, vector<8x320xf32>
    tpu.vector_store %arg4[%c96, %c0_41], %37 {strides = array<i32>} : memref<200x320xf32, #tpu.memory_space<vmem>>, vector<8x320xf32>,
    %c0_42 = arith.constant 0 : index
    %c0_43 = arith.constant 0 : index
    %c43 = arith.constant 43 : index
    %39 = vector.load %arg1[%c0_42, %c0_43, %c43] : memref<1x8x512xf32, #tpu.memory_space<vmem>>, vector<1x8x320xf32>
    %40 = vector.shape_cast %39 : vector<1x8x320xf32> to vector<8x320xf32>
    %c104 = arith.constant 104 : index
    %c0_44 = arith.constant 0 : index
    %41 = vector.load %arg4[%c104, %c0_44] : memref<200x320xf32, #tpu.memory_space<vmem>>, vector<8x320xf32>
    tpu.vector_store %arg4[%c104, %c0_44], %40 {strides = array<i32>} : memref<200x320xf32, #tpu.memory_space<vmem>>, vector<8x320xf32>,
    %c0_45 = arith.constant 0 : index
    %c0_46 = arith.constant 0 : index
    %c44 = arith.constant 44 : index
    %42 = vector.load %arg1[%c0_45, %c0_46, %c44] : memref<1x8x512xf32, #tpu.memory_space<vmem>>, vector<1x8x320xf32>
    %43 = vector.shape_cast %42 : vector<1x8x320xf32> to vector<8x320xf32>
    %c112 = arith.constant 112 : index
    %c0_47 = arith.constant 0 : index
    %44 = vector.load %arg4[%c112, %c0_47] : memref<200x320xf32, #tpu.memory_space<vmem>>, vector<8x320xf32>
    tpu.vector_store %arg4[%c112, %c0_47], %43 {strides = array<i32>} : memref<200x320xf32, #tpu.memory_space<vmem>>, vector<8x320xf32>,
    %c0_48 = arith.constant 0 : index
    %c0_49 = arith.constant 0 : index
    %c60 = arith.constant 60 : index
    %45 = vector.load %arg1[%c0_48, %c0_49, %c60] : memref<1x8x512xf32, #tpu.memory_space<vmem>>, vector<1x8x320xf32>
    %46 = vector.shape_cast %45 : vector<1x8x320xf32> to vector<8x320xf32>
    %c120 = arith.constant 120 : index
    %c0_50 = arith.constant 0 : index
    %47 = vector.load %arg4[%c120, %c0_50] : memref<200x320xf32, #tpu.memory_space<vmem>>, vector<8x320xf32>
    tpu.vector_store %arg4[%c120, %c0_50], %46 {strides = array<i32>} : memref<200x320xf32, #tpu.memory_space<vmem>>, vector<8x320xf32>,
    %c0_51 = arith.constant 0 : index
    %c0_52 = arith.constant 0 : index
    %c61 = arith.constant 61 : index
    %48 = vector.load %arg1[%c0_51, %c0_52, %c61] : memref<1x8x512xf32, #tpu.memory_space<vmem>>, vector<1x8x320xf32>
    %49 = vector.shape_cast %48 : vector<1x8x320xf32> to vector<8x320xf32>
    %c128 = arith.constant 128 : index
    %c0_53 = arith.constant 0 : index
    %50 = vector.load %arg4[%c128, %c0_53] : memref<200x320xf32, #tpu.memory_space<vmem>>, vector<8x320xf32>
    tpu.vector_store %arg4[%c128, %c0_53], %49 {strides = array<i32>} : memref<200x320xf32, #tpu.memory_space<vmem>>, vector<8x320xf32>,
    %c0_54 = arith.constant 0 : index
    %c0_55 = arith.constant 0 : index
    %c62 = arith.constant 62 : index
    %51 = vector.load %arg1[%c0_54, %c0_55, %c62] : memref<1x8x512xf32, #tpu.memory_space<vmem>>, vector<1x8x320xf32>
    %52 = vector.shape_cast %51 : vector<1x8x320xf32> to vector<8x320xf32>
    %c136 = arith.constant 136 : index
    %c0_56 = arith.constant 0 : index
    %53 = vector.load %arg4[%c136, %c0_56] : memref<200x320xf32, #tpu.memory_space<vmem>>, vector<8x320xf32>
    tpu.vector_store %arg4[%c136, %c0_56], %52 {strides = array<i32>} : memref<200x320xf32, #tpu.memory_space<vmem>>, vector<8x320xf32>,
    %c0_57 = arith.constant 0 : index
    %c0_58 = arith.constant 0 : index
    %c63 = arith.constant 63 : index
    %54 = vector.load %arg1[%c0_57, %c0_58, %c63] : memref<1x8x512xf32, #tpu.memory_space<vmem>>, vector<1x8x320xf32>
    %55 = vector.shape_cast %54 : vector<1x8x320xf32> to vector<8x320xf32>
    %c144 = arith.constant 144 : index
    %c0_59 = arith.constant 0 : index
    %56 = vector.load %arg4[%c144, %c0_59] : memref<200x320xf32, #tpu.memory_space<vmem>>, vector<8x320xf32>
    tpu.vector_store %arg4[%c144, %c0_59], %55 {strides = array<i32>} : memref<200x320xf32, #tpu.memory_space<vmem>>, vector<8x320xf32>,
    %c0_60 = arith.constant 0 : index
    %c0_61 = arith.constant 0 : index
    %c64_62 = arith.constant 64 : index
    %57 = vector.load %arg1[%c0_60, %c0_61, %c64_62] : memref<1x8x512xf32, #tpu.memory_space<vmem>>, vector<1x8x320xf32>
    %58 = vector.shape_cast %57 : vector<1x8x320xf32> to vector<8x320xf32>
    %c152 = arith.constant 152 : index
    %c0_63 = arith.constant 0 : index
    %59 = vector.load %arg4[%c152, %c0_63] : memref<200x320xf32, #tpu.memory_space<vmem>>, vector<8x320xf32>
    tpu.vector_store %arg4[%c152, %c0_63], %58 {strides = array<i32>} : memref<200x320xf32, #tpu.memory_space<vmem>>, vector<8x320xf32>,
    %c0_64 = arith.constant 0 : index
    %c0_65 = arith.constant 0 : index
    %c80_66 = arith.constant 80 : index
    %60 = vector.load %arg1[%c0_64, %c0_65, %c80_66] : memref<1x8x512xf32, #tpu.memory_space<vmem>>, vector<1x8x320xf32>
    %61 = vector.shape_cast %60 : vector<1x8x320xf32> to vector<8x320xf32>
    %c160 = arith.constant 160 : index
    %c0_67 = arith.constant 0 : index
    %62 = vector.load %arg4[%c160, %c0_67] : memref<200x320xf32, #tpu.memory_space<vmem>>, vector<8x320xf32>
    tpu.vector_store %arg4[%c160, %c0_67], %61 {strides = array<i32>} : memref<200x320xf32, #tpu.memory_space<vmem>>, vector<8x320xf32>,
    %c0_68 = arith.constant 0 : index
    %c0_69 = arith.constant 0 : index
    %c81 = arith.constant 81 : index
    %63 = vector.load %arg1[%c0_68, %c0_69, %c81] : memref<1x8x512xf32, #tpu.memory_space<vmem>>, vector<1x8x320xf32>
    %64 = vector.shape_cast %63 : vector<1x8x320xf32> to vector<8x320xf32>
    %c168 = arith.constant 168 : index
    %c0_70 = arith.constant 0 : index
    %65 = vector.load %arg4[%c168, %c0_70] : memref<200x320xf32, #tpu.memory_space<vmem>>, vector<8x320xf32>
    tpu.vector_store %arg4[%c168, %c0_70], %64 {strides = array<i32>} : memref<200x320xf32, #tpu.memory_space<vmem>>, vector<8x320xf32>,
    %c0_71 = arith.constant 0 : index
    %c0_72 = arith.constant 0 : index
    %c82 = arith.constant 82 : index
    %66 = vector.load %arg1[%c0_71, %c0_72, %c82] : memref<1x8x512xf32, #tpu.memory_space<vmem>>, vector<1x8x320xf32>
    %67 = vector.shape_cast %66 : vector<1x8x320xf32> to vector<8x320xf32>
    %c176 = arith.constant 176 : index
    %c0_73 = arith.constant 0 : index
    %68 = vector.load %arg4[%c176, %c0_73] : memref<200x320xf32, #tpu.memory_space<vmem>>, vector<8x320xf32>
    tpu.vector_store %arg4[%c176, %c0_73], %67 {strides = array<i32>} : memref<200x320xf32, #tpu.memory_space<vmem>>, vector<8x320xf32>,
    %c0_74 = arith.constant 0 : index
    %c0_75 = arith.constant 0 : index
    %c83 = arith.constant 83 : index
    %69 = vector.load %arg1[%c0_74, %c0_75, %c83] : memref<1x8x512xf32, #tpu.memory_space<vmem>>, vector<1x8x320xf32>
    %70 = vector.shape_cast %69 : vector<1x8x320xf32> to vector<8x320xf32>
    %c184 = arith.constant 184 : index
    %c0_76 = arith.constant 0 : index
    %71 = vector.load %arg4[%c184, %c0_76] : memref<200x320xf32, #tpu.memory_space<vmem>>, vector<8x320xf32>
    tpu.vector_store %arg4[%c184, %c0_76], %70 {strides = array<i32>} : memref<200x320xf32, #tpu.memory_space<vmem>>, vector<8x320xf32>,
    %c0_77 = arith.constant 0 : index
    %c0_78 = arith.constant 0 : index
    %c84 = arith.constant 84 : index
    %72 = vector.load %arg1[%c0_77, %c0_78, %c84] : memref<1x8x512xf32, #tpu.memory_space<vmem>>, vector<1x8x320xf32>
    %73 = vector.shape_cast %72 : vector<1x8x320xf32> to vector<8x320xf32>
    %c192 = arith.constant 192 : index
    %c0_79 = arith.constant 0 : index
    %74 = vector.load %arg4[%c192, %c0_79] : memref<200x320xf32, #tpu.memory_space<vmem>>, vector<8x320xf32>
    tpu.vector_store %arg4[%c192, %c0_79], %73 {strides = array<i32>} : memref<200x320xf32, #tpu.memory_space<vmem>>, vector<8x320xf32>,
    %c0_80 = arith.constant 0 : index
    %c0_81 = arith.constant 0 : index
    %c0_82 = arith.constant 0 : index
    %75 = vector.load %arg2[%c0_80, %c0_81, %c0_82] : memref<1x4x200xf32, #tpu.memory_space<vmem>>, vector<1x4x200xf32>
    %76 = vector.shape_cast %75 : vector<1x4x200xf32> to vector<4x200xf32>
    %c0_83 = arith.constant 0 : index
    %c0_84 = arith.constant 0 : index
    %77 = vector.load %arg4[%c0_83, %c0_84] : memref<200x320xf32, #tpu.memory_space<vmem>>, vector<200x320xf32>
    %cst = arith.constant dense<0.000000e+00> : vector<4x320xf32>
    %78 = tpu.matmul %76, %77, %cst {dimension_numbers = #tpu.dot_dimension_numbers<[1], [0], [0], [1], [0, 0, 1, 1], [], []>} : vector<4x200xf32>, vector<200x320xf32>, vector<4x320xf32> -> vector<4x320xf32>
    %cst_85 = arith.constant 2.000000e+01 : f32
    %79 = vector.broadcast %cst_85 : f32 to vector<4x320xf32>
    %80 = arith.minimumf %78, %79 : vector<4x320xf32>
    %81 = math.exp %80 : vector<4x320xf32>
    %cst_86 = arith.constant 1.000000e+00 : f32
    %82 = vector.broadcast %cst_86 : f32 to vector<4x320xf32>
    %83 = arith.addf %82, %81 : vector<4x320xf32>
    %84 = arith.mulf %83, %83 : vector<4x320xf32>
    %cst_87 = arith.constant 1.000000e+00 : f32
    %85 = vector.broadcast %cst_87 : f32 to vector<4x320xf32>
    %86 = arith.addf %84, %85 : vector<4x320xf32>
    %87 = tpu.reciprocal %86 {approx = true} : vector<4x320xf32> -> vector<4x320xf32>
    %cst_88 = arith.constant 2.000000e+00 : f32
    %88 = vector.broadcast %cst_88 : f32 to vector<4x320xf32>
    %89 = arith.mulf %88, %87 : vector<4x320xf32>
    %cst_89 = arith.constant 1.000000e+00 : f32
    %90 = vector.broadcast %cst_89 : f32 to vector<4x320xf32>
    %91 = arith.subf %90, %89 : vector<4x320xf32>
    %cst_90 = arith.constant 2.000000e+01 : f32
    %92 = vector.broadcast %cst_90 : f32 to vector<4x320xf32>
    %93 = arith.cmpf ogt, %78, %92 : vector<4x320xf32>
    %94 = arith.mulf %78, %91 : vector<4x320xf32>
    %95 = arith.select %93, %78, %94 : vector<4x320xi1>, vector<4x320xf32>
    %c0_91 = arith.constant 0 : index
    %c0_92 = arith.constant 0 : index
    %c0_93 = arith.constant 0 : index
    %96 = vector.load %arg3[%c0_91, %c0_92, %c0_93] : memref<1x4x320xf32, #tpu.memory_space<vmem>>, vector<1x4x320xf32>
    %97 = vector.shape_cast %96 : vector<1x4x320xf32> to vector<4x320xf32>
    %98 = vector.shape_cast %95 : vector<4x320xf32> to vector<1x4x320xf32>
    tpu.vector_store %arg3[%c0_91, %c0_92, %c0_93], %98 {strides = array<i32>} : memref<1x4x320xf32, #tpu.memory_space<vmem>>, vector<1x4x320xf32>,
    return
  }
  func.func @transform_0(%arg0: i32) -> (i32, i32, i32) {
    %c0_i32 = arith.constant 0 : i32
    %c0_i32_0 = arith.constant 0 : i32
    %c0_i32_1 = arith.constant 0 : i32
    return %arg0, %c0_i32, %c0_i32_0 : i32, i32, i32
  }
  func.func @transform_1(%arg0: i32) -> (i32, i32, i32) {
    %c0_i32 = arith.constant 0 : i32
    %c0_i32_0 = arith.constant 0 : i32
    %c0_i32_1 = arith.constant 0 : i32
    return %arg0, %c0_i32, %c0_i32_0 : i32, i32, i32
  }
  func.func @transform_2(%arg0: i32) -> (i32, i32, i32) {
    %c0_i32 = arith.constant 0 : i32
    %c0_i32_0 = arith.constant 0 : i32
    %c0_i32_1 = arith.constant 0 : i32
    return %arg0, %c0_i32, %c0_i32_0 : i32, i32, i32
  }
}

</mosaic_0001>

<bundles_post_ra>
// kernel: tpu_custom_call.1
= control target key start
LH: loop header
LB: loop body
LE: loop exit
PB: predicated region body
PF: predicated region fallthrough
CT: control target
= control target key end

     0   :  { %7 = vsyncpa [#allocation4], 0  ;;  %s1773_s0 = inlined_call_operand.hbm [shape: f32[2,8,512], index: 0, kind: input, shape index: {}]   ;;  %s1774_s1 = inlined_call_operand.hbm [shape: f32[2,4,200], index: 1, kind: input, shape index: {}]   ;;  %s1775_s2 = inlined_call_operand.hbm [shape: f32[2,4,320], index: 2, kind: output, shape index: {}]  }
   0x1   :  { %9 = vsyncpa [#allocation4 + $0x1], 0 }
   0x2   :  { %10 = vsyncpa [#allocation7], 0 }
   0x3   :  { %12 = vsyncpa [#allocation7 + $0x1], 0 }
   0x4   :  { %13 = vsyncpa [#allocation5], 0 }
   0x5   :  { %15 = vsyncpa [#allocation5 + $0x1], 0  ;;  %s1385_s9 = smov 0   ;;  %s1387_s10 = smov 0  }
   0x6   :  { %s1389_s11 = smov 0   ;;  %s1391_s12 = smov 0  }
   0x7 LB: > { %s1406_s13 = sadd.s32 4294967295, %s1340_s12   ;;  %s1106_s14 = sadd.s32 4294967294, %s1340_s12   ;;  %s1340_s12 = sphi %s1391_s12, %s1794_s12   ;;  %s1336_s11 = sphi %s1389_s11, %s1793_s11   ;;  %s1332_s10 = sphi %s1387_s10, %s1792_s10   ;;  %s1328_s9 = sphi %s1385_s9, %s1791_s9  }
   0x8   : > { %s1410_s15 = sadd.s32 1, %s1340_s12   ;;  %s28_s16 = sadd.s32 1, %s1336_s11 }
   0x9   : > { %s25_s17 = ssub.s32 %s1340_s12, %s1410_s15  ;;  %p35_p0 = scmp.ne.s32.totalorder %s1336_s11, %s1332_s10 }
   0xa   : > { %p26_p1 = scmp.eq.s32.totalorder %s25_s17, 0  ;;  %p36_p2 = scmp.eq.s32.totalorder %s1340_s12, 0 }
   0xb   : > { %p41_p3 = scmp.ne.s32.totalorder %s1332_s10, %s1328_s9  ;;  %p42_p4 = scmp.eq.s32.totalorder %s1406_s13, 0 }
   0xc   : > { %s1422_s18 = scalar_select %p26_p1, %s1336_s11, %s28_s16  }
   0xd   : > { %p1424_p5 = por %p36_p2, %p35_p0  ;;  %p1428_p6 = por %p42_p4, %p41_p3 }
   0xe   : > { %p91_p7 = scmp.eq.s32.totalorder %s1406_s13, 1  ;;  %p97_p8 = scmp.eq.s32.totalorder %s1106_s14, 1 }
   0xf   : > { %s1779_s20 = scalar_select %p1428_p6, 1, 0 }
  0x10   : > { %p1144_p10 = scmp.lt.s32.totalorder %s1340_s12, 2  ;;  %p1435_p11 = por %p91_p7, %p35_p0 }
  0x11   : > { %p1439_p12 = por %p97_p8, %p41_p3  ;;  %s1444_s23 = sand.u32 1, %s1336_s11  }
  0x12   : > { %s1780_s21 = scalar_select %p1435_p11, 1, 0 }
  0x13   : > { %s1781_s22 = scalar_select %p1439_p12, 1, 0 }
  0x14   : > { %s1123_s24 = sshll.u32 %s1340_s12, 9  ;;  %s1109_s25 = sshll.u32 %s1444_s23, 5 }
  0x15   : > { %s1451_s28 = scalar_lea.hbm %s1773_s0, %s1123_s24  ;;  %s121_s29 = scalar_lea.vmem [#allocation3], %s1109_s25 }
  0x16   : > { %s129_s30 = sshll.u32 %s121_s29, 4  ;;  %p1455_p13 = pnand %p1144_p10, %p1424_p5  ;;  %s1459_s30 = int_to_ptr.vmem [resolvable:$true] %s129_s30 }
  0x17   : > { %s118_s4 = scalar_lea.sflag [#allocation4], %s1444_s23  ;;  %s1216_s5 = scalar_lea.hbm %s1451_s28, 512 }
  0x18   : > { %p1217_p2 = scmp.ne.s32.totalorder %s1451_s28, %s1216_s5  ;;  %p1218_p3 = pneg %p1455_p13 }
  0x19   : > { %s1221_s8 = scalar_lea.hbm %s1773_s0, 1024  ;;  %p1222_p5 = scmp.lt.s32.totalorder %s1451_s28, %s1773_s0 }
  0x1a   : > { %p1219_p4 = pnand %p1218_p3, %p1217_p2  ;;  %p1223_p8 = scmp.lt.s32.totalorder %s1221_s8, %s1216_s5 }
  0x1c   : > { %p1220_p7 = pneg %p1219_p4  ;;  %p1224_p10 = por %p1223_p8, %p1222_p5 }
  0x1e   : > { %p1225_p9 = pnand %p1224_p10, %p1220_p7 }
  0x20   : > { %1228 = shalt.err (!%p1225_p9)
}
  0x21   : > { %s1229_s17 = scalar_lea.vmem %s1459_s30, 512  ;;  %s1342_s19 = smov [#allocation3]  }
  0x22   : > { %p1230_p0 = scmp.ne.s32.totalorder %s1459_s30, %s1229_s17  ;;  %s1234_s24 = sshll.u32 %s1342_s19, 4  ;;  %s1235_s24 = int_to_ptr.vmem [resolvable:$false] %s1234_s24 }
  0x23   : > { %s1236_s25 = scalar_lea.vmem %s1235_s24, 1024  ;;  %p1237_p1 = scmp.lt.s32.totalorder %s1459_s30, %s1235_s24 }
  0x24   : > { %p1232_p2 = pnand %p1230_p0, %p1218_p3  ;;  %p1238_p12 = scmp.lt.s32.totalorder %s1236_s25, %s1229_s17 }
  0x26   : > { %p1233_p4 = pneg %p1232_p2  ;;  %p1239_p11 = por %p1238_p12, %p1237_p1 }
  0x28   : > { %p1240_p5 = pnand %p1239_p11, %p1233_p4 }
  0x2a   : > { %1243 = shalt.err (!%p1240_p5)
}
  0x2b   : > { %1136 = dma.hbm_to_vmem [thread:$0]  (!%p1455_p13), %s1451_s28, 512, %s1459_s30, %s118_s4  }
  0x2c   : > { %p1783_p9 = scmp.lt.s32.totalorder %s1340_s12, 3  ;;  %p1784_p0 = scmp.ge.s32.totalorder %s1340_s12, 1 }
  0x2d   : > { %s1112_s27 = sshll.u32 %s1444_s23, 3  ;;  %s1124_s29 = sshll.u32 %s1340_s12, 7 }
  0x2e   : > { %p1492_p7 = pnand %p1784_p0, %p1783_p9  ;;  %s1501_s7 = scalar_lea.hbm %s1774_s1, %s1124_s29 }
  0x2f   : > { %s140_s8 = scalar_lea.vmem [#allocation6], %s1112_s27  ;;  %s137_s28 = scalar_lea.sflag [#allocation7], %s1444_s23 }
  0x30   : > { %s1785_s26 = scalar_select %p1492_p7, 1, 0 }
  0x31   : > { %s148_s14 = sshll.u32 %s140_s8, 4  ;;  %s1244_s30 = scalar_lea.hbm %s1501_s7, 128  ;;  %s149_s14 = int_to_ptr.vmem [resolvable:$true] %s148_s14 }
  0x32   : > { %p1245_p11 = scmp.ne.s32.totalorder %s1501_s7, %s1244_s30  ;;  %s1249_s17 = scalar_lea.hbm %s1774_s1, 256 }
  0x33   : > { %p1250_p8 = scmp.lt.s32.totalorder %s1501_s7, %s1774_s1  ;;  %p1251_p10 = scmp.lt.s32.totalorder %s1249_s17, %s1244_s30 }
  0x34   : > { %p1247_p12 = pnand %p1245_p11, %p1218_p3 }
  0x35   : > { %p1252_p2 = por %p1251_p10, %p1250_p8 }
  0x36   : > { %p1248_p1 = pneg %p1247_p12 }
  0x38   : > { %p1253_p4 = pnand %p1252_p2, %p1248_p1 }
  0x3a   : > { %1256 = shalt.err (!%p1253_p4)
}
  0x3b   : > { %s1257_s25 = scalar_lea.vmem %s149_s14, 128  ;;  %s1343_s23 = smov [#allocation6]  }
  0x3c   : > { %p1258_p5 = scmp.ne.s32.totalorder %s149_s14, %s1257_s25  ;;  %s1262_s27 = sshll.u32 %s1343_s23, 4  ;;  %s1263_s27 = int_to_ptr.vmem [resolvable:$false] %s1262_s27 }
  0x3d   : > { %s1264_s29 = scalar_lea.vmem %s1263_s27, 256  ;;  %p1265_p11 = scmp.lt.s32.totalorder %s149_s14, %s1263_s27 }
  0x3e   : > { %p1260_p9 = pnand %p1258_p5, %p1218_p3  ;;  %p1266_p12 = scmp.lt.s32.totalorder %s1264_s29, %s1257_s25 }
  0x40   : > { %p1261_p0 = pneg %p1260_p9  ;;  %p1267_p6 = por %p1266_p12, %p1265_p11 }
  0x42   : > { %p1268_p7 = pnand %p1267_p6, %p1261_p0 }
  0x44   : > { %1271 = shalt.err (!%p1268_p7)
}
  0x45   : > { %1139 = dma.hbm_to_vmem [thread:$0]  (!%p1455_p13), %s1501_s7, 128, %s149_s14, %s137_s28  }
  0x46   : > { %p1786_p1 = scmp.ne.s32.totalorder %s1785_s26, 0 }
  0x47   : > { %s1525_s5 = sand.u32 (!%p1786_p1), 1, %s1332_s10   ;;  %p1787_p3 = scmp.ne.s32.totalorder (!%p1786_p1), %s1779_s20, 0 }
  0x48   : > { %157 = sbr.rel (%p1786_p1) target bundleno = 606 (0x25e), region = 28  ;;  %s1116_s6 = sshll.u32 (!%p1786_p1), %s1525_s5, 5 }
  0x49   : > { %s160_s8 = scalar_lea.sflag (!%p1786_p1), [#allocation4], %s1525_s5  ;;  %s1529_s30 = scalar_lea.vmem (!%p1786_p1), [#allocation3], %s1116_s6 }
  0x4d   : > { %1315 = dma.done.wait (%p1787_p3), %s160_s8, 512  }
  0x4e   : > { %1317 = vsyncadd (%p1787_p3), %s160_s8, 4294966784  ;;  %s1117_s3 = sshll.u32 %s1525_s5, 3  ;;  %s169_s26 = scalar_lea.sflag [#allocation7], %s1525_s5 }
  0x4f   : > { %s1537_s7 = scalar_lea.vmem [#allocation6], %s1117_s3 }
  0x50   : > { %1319 = dma.done.wait (%p1787_p3), %s169_s26, 128  }
  0x51   : > { %1321 = vsyncadd (%p1787_p3), %s169_s26, 4294967168  ;;  %v1344_v0 = vmov 0.0   ;;  %v1545_v1 = vld [vmem:[%s1529_s30 + $0x8] sm:$0xff]  ;;  %v1548_v2 = vld [vmem:[%s1529_s30] sm:$0xff]  ;;  %vm203_vm0 = vcmask 523264   ;;  %s1345_s14 = smov 68  }
  0x52   : > { %885 = vmatprep.subr.mxu1 %v1344_v0  ;;  %v1551_v3 = vld [vmem:[%s1529_s30 + $0x10] sm:$0xff]  ;;  %507 = vrot.lane.b32.xlu0 %v1545_v1, %s1345_s14  ;;  %s1346_s20 = smov 84   ;;  %s1347_s28 = smov 85   ;;  %v1613_v4 = vld [vmem:[%s1529_s30 + $0x18] sm:$0xff]  ;;  %vm511_vm1 = vcmask 556032   ;;  %vm490_vm2 = vcmask 687104  }
  0x53   : > { %505 = vrot.lane.b32.xlu1 %v1548_v2, %s1345_s14  ;;  %204 = vst.msk [vmem:[#allocation2 + $0x10] sm:$0xff] %vm203_vm0, %v1551_v3  ;;  %s1348_s4 = smov 86   ;;  %s1349_s16 = smov 87   ;;  %vm469_vm3 = vcmask 695296   ;;  %vm448_vm4 = vcmask 703488   ;;  %vm427_vm5 = vcmask 711680  }
  0x54   : > { %s1350_s17 = smov 88   ;;  %s1351_s19 = smov 104   ;;  %v1649_v30 = vld [vmem:[%s1537_s7] sm:$0xff]  ;;  %vm811_vm6 = vcmask 588800   ;;  %vm406_vm7 = vcmask 719872   ;;  %vm385_vm8 = vcmask 850944  }
  0x55   : > { %s1352_s24 = smov 105   ;;  %s1353_s25 = smov 106   ;;  %v810_v32 = vcombine.high %v1649_v30, %v1649_v30  ;;  %vm364_vm9 = vcmask 859136   ;;  %vm343_vm10 = vcmask 867328   ;;  %vm322_vm11 = vcmask 875520  }
  0x56   : > { %509 = vrot.lane.b32.xlu0 %v1551_v3, %s1345_s14  ;;  %s1354_s23 = smov 107   ;;  %s1355_s27 = smov 108   ;;  %vm301_vm12 = vcmask 883712   ;;  %vm280_vm13 = vcmask 1014784   ;;  %vm259_vm14 = vcmask 1022976   ;;  %vm238_vm15 = vcmask 1031168  }
  0x57   : > { %486 = vrot.lane.b32.xlu1 %v1545_v1, %s1346_s20  ;;  %s1356_s29 = smov 124   ;;  %s1357_s6 = smov 125   ;;  %1119 = vmatprep.mubr.msk.f32.mxu1 %vm811_vm6, %v810_v32 }
  0x58   : > { %s1358_s8 = smov 126   ;;  %s1359_s3 = smov 127   ;;  %1118 = vmatprep.mubr.msk.f32.mxu0 %vm811_vm6, %v810_v32  ;;  %vm619_vm6 = vcmask 392192  }
  0x59   : > { %s1360_s26 = smov 44   ;;  %s1361_s14 = smov 45  }
  0x5a   : > { %488 = vrot.lane.b32.xlu0 %v1551_v3, %s1346_s20  ;;  %s1365_s30 = smov 64   ;;  %s1368_s7 = smov 67  }
  0x5b   : > { %484 = vrot.lane.b32.xlu1 %v1548_v2, %s1346_s20  ;;  %s1362_s20 = smov 46   ;;  %p1788_p13 = scmp.ne.s32.totalorder %s1780_s21, 0 }
  0x5e   : > { %465 = vrot.lane.b32.xlu0 %v1545_v1, %s1347_s28 }
  0x5f   : > { %467 = vrot.lane.b32.xlu1 %v1551_v3, %s1347_s28 }
  0x62   : > { %463 = vrot.lane.b32.xlu0 %v1548_v2, %s1347_s28  ;;  %s1363_s28 = smov 47  }
  0x63   : > { %444 = vrot.lane.b32.xlu1 %v1545_v1, %s1348_s4 }
  0x66   : > { %446 = vrot.lane.b32.xlu0 %v1551_v3, %s1348_s4 }
  0x67   : > { %442 = vrot.lane.b32.xlu1 %v1548_v2, %s1348_s4  ;;  %s1364_s4 = smov 48  }
  0x6a   : > { %423 = vrot.lane.b32.xlu0 %v1545_v1, %s1349_s16 }
  0x6b   : > { %425 = vrot.lane.b32.xlu1 %v1551_v3, %s1349_s16 }
  0x6e   : > { %421 = vrot.lane.b32.xlu0 %v1548_v2, %s1349_s16  ;;  %s1366_s16 = smov 65  }
  0x6f   : > { %402 = vrot.lane.b32.xlu1 %v1545_v1, %s1350_s17 }
  0x72   : > { %404 = vrot.lane.b32.xlu0 %v1551_v3, %s1350_s17 }
  0x73   : > { %400 = vrot.lane.b32.xlu1 %v1548_v2, %s1350_s17  ;;  %s1367_s17 = smov 66  }
  0x76   : > { %381 = vrot.lane.b32.xlu0 %v1545_v1, %s1351_s19 }
  0x77   : > { %383 = vrot.lane.b32.xlu1 %v1551_v3, %s1351_s19 }
  0x7a   : > { %379 = vrot.lane.b32.xlu0 %v1548_v2, %s1351_s19  ;;  %s1125_s19 = smul.u32 12, %s1525_s5 }
  0x7b   : > { %360 = vrot.lane.b32.xlu1 %v1545_v1, %s1352_s24 }
  0x7e   : > { %362 = vrot.lane.b32.xlu0 %v1551_v3, %s1352_s24 }
  0x7f   : > { %358 = vrot.lane.b32.xlu1 %v1548_v2, %s1352_s24  ;;  %s1126_s24 = smul.u32 192, %s1406_s13  ;;  %s999_s13 = scalar_lea.sflag [#allocation5], %s1525_s5 }
  0x82   : > { %339 = vrot.lane.b32.xlu0 %v1545_v1, %s1353_s25 }
  0x83   : > { %341 = vrot.lane.b32.xlu1 %v1551_v3, %s1353_s25 }
  0x86   : > { %337 = vrot.lane.b32.xlu0 %v1548_v2, %s1353_s25  ;;  %s197_s25 = scalar_lea.vmem [#allocation8], %s1125_s19 }
  0x87   : > { %318 = vrot.lane.b32.xlu1 %v1545_v1, %s1354_s23 }
  0x8a   : > { %320 = vrot.lane.b32.xlu0 %v1551_v3, %s1354_s23 }
  0x8b   : > { %316 = vrot.lane.b32.xlu1 %v1548_v2, %s1354_s23  ;;  %s1013_s23 = sshll.u32 %s197_s25, 4  ;;  %s1732_s23 = int_to_ptr.vmem [resolvable:$true] %s1013_s23 }
  0x8e   : > { %297 = vrot.lane.b32.xlu0 %v1545_v1, %s1355_s27 }
  0x8f   : > { %299 = vrot.lane.b32.xlu1 %v1551_v3, %s1355_s27 }
  0x92   : > { %295 = vrot.lane.b32.xlu0 %v1548_v2, %s1355_s27 }
  0x93   : > { %276 = vrot.lane.b32.xlu1 %v1545_v1, %s1356_s29 }
  0x96   : > { %278 = vrot.lane.b32.xlu0 %v1551_v3, %s1356_s29 }
  0x97   : > { %274 = vrot.lane.b32.xlu1 %v1548_v2, %s1356_s29 }
  0x9a   : > { %255 = vrot.lane.b32.xlu0 %v1545_v1, %s1357_s6 }
  0x9b   : > { %257 = vrot.lane.b32.xlu1 %v1551_v3, %s1357_s6 }
  0x9e   : > { %253 = vrot.lane.b32.xlu0 %v1548_v2, %s1357_s6  ;;  %s1730_s6 = scalar_lea.hbm %s1775_s2, %s1126_s24 }
  0x9f   : > { %234 = vrot.lane.b32.xlu1 %v1545_v1, %s1358_s8 }
  0xa2   : > { %236 = vrot.lane.b32.xlu0 %v1551_v3, %s1358_s8 }
  0xa3   : > { %232 = vrot.lane.b32.xlu1 %v1548_v2, %s1358_s8  ;;  %s1272_s8 = scalar_lea.vmem %s1732_s23, 192 }
  0xa4   : > { %p1273_p6 = scmp.ne.s32.totalorder %s1732_s23, %s1272_s8 }
  0xa6   : > { %213 = vrot.lane.b32.xlu0 %v1545_v1, %s1359_s3  ;;  %p1274_p7 = pnand %p1273_p6, %p1788_p13 }
  0xa7   : > { %215 = vrot.lane.b32.xlu1 %v1551_v3, %s1359_s3 }
  0xa8   : > { %p1275_p8 = pneg %p1274_p7 }
  0xaa   : > { %211 = vrot.lane.b32.xlu0 %v1548_v2, %s1359_s3  ;;  %s1369_s3 = smov [#allocation8]  }
  0xab   : > { %717 = vrot.lane.b32.xlu1 %v1545_v1, %s1360_s26 }
  0xae   : > { %719 = vrot.lane.b32.xlu0 %v1551_v3, %s1360_s26 }
  0xaf   : > { %715 = vrot.lane.b32.xlu1 %v1548_v2, %s1360_s26 }
  0xb2   : > { %691 = vrot.lane.b32.xlu0 %v1545_v1, %s1361_s14 }
  0xb3   : > { %693 = vrot.lane.b32.xlu1 %v1551_v3, %s1361_s14 }
  0xb6   : > { %689 = vrot.lane.b32.xlu0 %v1548_v2, %s1361_s14 }
  0xb7   : > { %665 = vrot.lane.b32.xlu1 %v1545_v1, %s1362_s20 }
  0xba   : > { %667 = vrot.lane.b32.xlu0 %v1551_v3, %s1362_s20 }
  0xbb   : > { %663 = vrot.lane.b32.xlu1 %v1548_v2, %s1362_s20 }
  0xbe   : > { %721 = vrot.lane.b32.xlu0 %v1613_v4, %s1360_s26  ;;  %s1276_s26 = sshll.u32 %s1369_s3, 4  ;;  %s1277_s26 = int_to_ptr.vmem [resolvable:$false] %s1276_s26 }
  0xbf   : > { %639 = vrot.lane.b32.xlu1 %v1545_v1, %s1363_s28  ;;  %p1279_p10 = scmp.lt.s32.totalorder %s1732_s23, %s1277_s26 }
  0xc2   : > { %641 = vrot.lane.b32.xlu0 %v1551_v3, %s1363_s28 }
  0xc3   : > { %637 = vrot.lane.b32.xlu1 %v1548_v2, %s1363_s28 }
  0xc4   : > { %v508_v5 = vpop.permute.xlu0 %507 }
  0xc5   : > { %v506_v6 = vpop.permute.xlu1 %505 }
  0xc6   : > { %v512_v7 = vsel %vm511_vm1, %v506_v6, %v508_v5  ;;  %695 = vrot.lane.b32.xlu0 %v1613_v4, %s1361_s14  ;;  %s1278_s14 = scalar_lea.vmem %s1277_s26, 384 }
  0xc7   : > { %613 = vrot.lane.b32.xlu1 %v1545_v1, %s1364_s4  ;;  %p1280_p2 = scmp.lt.s32.totalorder %s1278_s14, %s1272_s8 }
  0xc8   : > { %v510_v8 = vpop.permute.xlu0 %509 }
  0xc9   : > { %v487_v9 = vpop.permute.xlu1 %486  ;;  %v513_v10 = vsel %vm511_vm1, %v508_v5, %v510_v8  ;;  %519 = vst.msk [vmem:[#allocation2 + $0x178] sm:$0xff] %vm203_vm0, %v510_v8  ;;  %vm217_vm1 = vcmask 1039360   ;;  %p1281_p4 = por %p1280_p2, %p1279_p10 }
  0xca   : > { %615 = vrot.lane.b32.xlu0 %v1551_v3, %s1364_s4  ;;  %814 = vmatprep.subr.mxu0 %v513_v10 }
  0xcb   : > { %611 = vrot.lane.b32.xlu1 %v1548_v2, %s1364_s4  ;;  %815 = vmatpush1.msra.mxu0 %v512_v7  ;;  %p1282_p5 = pnand %p1281_p4, %p1275_p8 }
  0xcc   : > { %v489_v11 = vpop.permute.xlu0 %488 }
  0xcd   : > { %v485_v12 = vpop.permute.xlu1 %484  ;;  %v492_v13 = vsel %vm490_vm2, %v487_v9, %v489_v11  ;;  %498 = vst.msk [vmem:[#allocation2 + $0x160] sm:$0xff] %vm203_vm0, %v489_v11 }
  0xce   : > { %v491_v14 = vsel %vm490_vm2, %v485_v12, %v487_v9  ;;  %669 = vrot.lane.b32.xlu0 %v1613_v4, %s1362_s20  ;;  %816 = vmatprep.subr.mxu0 %v492_v13  ;;  %vm723_vm2 = vcmask 359424  }
  0xcf   : > { %591 = vrot.lane.b32.xlu1 %v1545_v1, %s1365_s30  ;;  %817 = vmatpush1.msra.mxu0 %v491_v14 }
  0xd0   : > { %v466_v16 = vpop.permute.xlu0 %465  ;;  %v781_v17 = vld [vmem:[#allocation2 + $0x178] sm:$0xff] }
  0xd1   : > { %v468_v15 = vpop.permute.xlu1 %467  ;;  %886 = vmatpush1.msra.mxu1 %v781_v17 }
  0xd2   : > { %477 = vst.msk [vmem:[#allocation2 + $0x148] sm:$0xff] %vm203_vm0, %v468_v15  ;;  %v471_v18 = vsel %vm469_vm3, %v466_v16, %v468_v15  ;;  %593 = vrot.lane.b32.xlu0 %v1551_v3, %s1365_s30  ;;  %887 = vmatprep.subr.mxu1 %v1344_v0 }
  0xd3   : > { %589 = vrot.lane.b32.xlu1 %v1548_v2, %s1365_s30  ;;  %818 = vmatprep.subr.mxu0 %v471_v18 }
  0xd4   : > { %v464_v19 = vpop.permute.xlu0 %463  ;;  %v778_v21 = vld [vmem:[#allocation2 + $0x160] sm:$0xff] }
  0xd5   : > { %v445_v20 = vpop.permute.xlu1 %444  ;;  %v470_v22 = vsel %vm469_vm3, %v464_v19, %v466_v16  ;;  %888 = vmatpush1.msra.mxu1 %v778_v21  ;;  %vm697_vm3 = vcmask 367616  }
  0xd6   : > { %643 = vrot.lane.b32.xlu0 %v1613_v4, %s1363_s28  ;;  %889 = vmatprep.subr.mxu1 %v1344_v0 }
  0xd7   : > { %570 = vrot.lane.b32.xlu1 %v1545_v1, %s1366_s16  ;;  %819 = vmatpush1.msra.mxu0 %v470_v22 }
  0xd8   : > { %v447_v23 = vpop.permute.xlu0 %446 }
  0xd9   : > { %v443_v24 = vpop.permute.xlu1 %442  ;;  %v775_v25 = vld [vmem:[#allocation2 + $0x148] sm:$0xff]  ;;  %v450_v26 = vsel %vm448_vm4, %v445_v20, %v447_v23  ;;  %456 = vst.msk [vmem:[#allocation2 + $0x130] sm:$0xff] %vm203_vm0, %v447_v23 }
  0xda   : > { %v449_v27 = vsel %vm448_vm4, %v443_v24, %v445_v20  ;;  %890 = vmatpush1.msra.mxu1 %v775_v25  ;;  %572 = vrot.lane.b32.xlu0 %v1551_v3, %s1366_s16  ;;  %vm671_vm4 = vcmask 375808  }
  0xdb   : > { %568 = vrot.lane.b32.xlu1 %v1548_v2, %s1366_s16  ;;  %891 = vmatprep.subr.mxu1 %v1344_v0 }
  0xdc   : > { %820 = vmatprep.subr.mxu0 %v450_v26  ;;  %v424_v29 = vpop.permute.xlu0 %423 }
  0xdd   : > { %v426_v28 = vpop.permute.xlu1 %425  ;;  %821 = vmatpush1.msra.mxu0 %v449_v27 }
  0xde   : > { %435 = vst.msk [vmem:[#allocation2 + $0x118] sm:$0xff] %vm203_vm0, %v426_v28  ;;  %v429_v31 = vsel %vm427_vm5, %v424_v29, %v426_v28  ;;  %617 = vrot.lane.b32.xlu0 %v1613_v4, %s1364_s4 }
  0xdf   : > { %549 = vrot.lane.b32.xlu1 %v1545_v1, %s1367_s17  ;;  %822 = vmatprep.subr.mxu0 %v429_v31 }
  0xe0   : > { %v422_v33 = vpop.permute.xlu0 %421  ;;  %v772_v35 = vld [vmem:[#allocation2 + $0x130] sm:$0xff] }
  0xe1   : > { %v403_v34 = vpop.permute.xlu1 %402  ;;  %v428_v36 = vsel %vm427_vm5, %v422_v33, %v424_v29  ;;  %892 = vmatpush1.msra.mxu1 %v772_v35  ;;  %vm645_vm5 = vcmask 384000  }
  0xe2   : > { %551 = vrot.lane.b32.xlu0 %v1551_v3, %s1367_s17  ;;  %893 = vmatprep.subr.mxu1 %v1344_v0 }
  0xe3   : > { %547 = vrot.lane.b32.xlu1 %v1548_v2, %s1367_s17  ;;  %823 = vmatpush1.msra.mxu0 %v428_v36 }
  0xe4   : > { %v405_v37 = vpop.permute.xlu0 %404 }
  0xe5   : > { %v401_v38 = vpop.permute.xlu1 %400  ;;  %v769_v39 = vld [vmem:[#allocation2 + $0x118] sm:$0xff]  ;;  %v408_v40 = vsel %vm406_vm7, %v403_v34, %v405_v37  ;;  %414 = vst.msk [vmem:[#allocation2 + $0x100] sm:$0xff] %vm203_vm0, %v405_v37 }
  0xe6   : > { %v407_v41 = vsel %vm406_vm7, %v401_v38, %v403_v34  ;;  %894 = vmatpush1.msra.mxu1 %v769_v39  ;;  %528 = vrot.lane.b32.xlu0 %v1545_v1, %s1368_s7  ;;  %vm574_vm7 = vcmask 531456  }
  0xe7   : > { %530 = vrot.lane.b32.xlu1 %v1551_v3, %s1368_s7  ;;  %895 = vmatprep.subr.mxu1 %v1344_v0 }
  0xe8   : > { %824 = vmatprep.subr.mxu0 %v408_v40  ;;  %v382_v43 = vpop.permute.xlu0 %381  ;;  %v736_v40 = vld [vmem:[#allocation2 + $0x10] sm:$0xff] }
  0xe9   : > { %v384_v42 = vpop.permute.xlu1 %383  ;;  %825 = vmatpush1.msra.mxu0 %v407_v41 }
  0xea   : > { %393 = vst.msk [vmem:[#allocation2 + $0xe8] sm:$0xff] %vm203_vm0, %v384_v42  ;;  %v387_v44 = vsel %vm385_vm8, %v382_v43, %v384_v42  ;;  %526 = vrot.lane.b32.xlu0 %v1548_v2, %s1368_s7 }
  0xeb   : > { %826 = vmatprep.subr.mxu0 %v387_v44 }
  0xec   : > { %v380_v45 = vpop.permute.xlu0 %379  ;;  %v766_v47 = vld [vmem:[#allocation2 + $0x100] sm:$0xff] }
  0xed   : > { %v361_v46 = vpop.permute.xlu1 %360  ;;  %v386_v48 = vsel %vm385_vm8, %v380_v45, %v382_v43  ;;  %896 = vmatpush1.msra.mxu1 %v766_v47  ;;  %vm553_vm8 = vcmask 539648  }
  0xee   : > { %897 = vmatprep.subr.mxu1 %v1344_v0  ;;  %827 = vmatpush1.msra.mxu0 %v386_v48 }
  0xf0   : > { %v363_v49 = vpop.permute.xlu0 %362 }
  0xf1   : > { %v359_v50 = vpop.permute.xlu1 %358  ;;  %v763_v51 = vld [vmem:[#allocation2 + $0xe8] sm:$0xff]  ;;  %v366_v52 = vsel %vm364_vm9, %v361_v46, %v363_v49  ;;  %372 = vst.msk [vmem:[#allocation2 + $0xd0] sm:$0xff] %vm203_vm0, %v363_v49 }
  0xf2   : > { %v365_v53 = vsel %vm364_vm9, %v359_v50, %v361_v46  ;;  %898 = vmatpush1.msra.mxu1 %v763_v51  ;;  %828 = vmatprep.subr.mxu0 %v366_v52  ;;  %vm532_vm9 = vcmask 547840  }
  0xf3   : > { %899 = vmatprep.subr.mxu1 %v1344_v0  ;;  %829 = vmatpush1.msra.mxu0 %v365_v53 }
  0xf4   : > { %v340_v55 = vpop.permute.xlu0 %339 }
  0xf5   : > { %v342_v54 = vpop.permute.xlu1 %341 }
  0xf6   : > { %351 = vst.msk [vmem:[#allocation2 + $0xb8] sm:$0xff] %vm203_vm0, %v342_v54  ;;  %v345_v56 = vsel %vm343_vm10, %v340_v55, %v342_v54 }
  0xf7   : > { %830 = vmatprep.subr.mxu0 %v345_v56 }
  0xf8   : > { %v338_v57 = vpop.permute.xlu0 %337  ;;  %v760_v59 = vld [vmem:[#allocation2 + $0xd0] sm:$0xff] }
  0xf9   : > { %v319_v58 = vpop.permute.xlu1 %318  ;;  %v344_v60 = vsel %vm343_vm10, %v338_v57, %v340_v55  ;;  %900 = vmatpush1.msra.mxu1 %v760_v59 }
  0xfa   : > { %901 = vmatprep.subr.mxu1 %v1344_v0  ;;  %831 = vmatpush1.msra.mxu0 %v344_v60 }
  0xfc   : > { %v321_v61 = vpop.permute.xlu0 %320 }
  0xfd   : > { %v317_v62 = vpop.permute.xlu1 %316  ;;  %v757_v63 = vld [vmem:[#allocation2 + $0xb8] sm:$0xff]  ;;  %v324_v3 = vsel %vm322_vm11, %v319_v58, %v321_v61  ;;  %330 = vst.msk [vmem:[#allocation2 + $0xa0] sm:$0xff] %vm203_vm0, %v321_v61 }
  0xfe   : > { %v323_v4 = vsel %vm322_vm11, %v317_v62, %v319_v58  ;;  %902 = vmatpush1.msra.mxu1 %v757_v63  ;;  %832 = vmatprep.subr.mxu0 %v324_v3  ;;  %vm996_vm11 = vcmask 519168  }
  0xff   : > { %903 = vmatprep.subr.mxu1 %v1344_v0  ;;  %833 = vmatpush1.msra.mxu0 %v323_v4 }
 0x100   : > { %v298_v6 = vpop.permute.xlu0 %297 }
 0x101   : > { %v300_v5 = vpop.permute.xlu1 %299 }
 0x102   : > { %309 = vst.msk [vmem:[#allocation2 + $0x88] sm:$0xff] %vm203_vm0, %v300_v5  ;;  %v303_v7 = vsel %vm301_vm12, %v298_v6, %v300_v5 }
 0x103   : > { %834 = vmatprep.subr.mxu0 %v303_v7 }
 0x104   : > { %v296_v8 = vpop.permute.xlu0 %295  ;;  %v754_v10 = vld [vmem:[#allocation2 + $0xa0] sm:$0xff] }
 0x105   : > { %v277_v9 = vpop.permute.xlu1 %276  ;;  %v302_v11 = vsel %vm301_vm12, %v296_v8, %v298_v6  ;;  %904 = vmatpush1.msra.mxu1 %v754_v10 }
 0x106   : > { %905 = vmatprep.subr.mxu1 %v1344_v0  ;;  %835 = vmatpush1.msra.mxu0 %v302_v11 }
 0x108   : > { %v279_v12 = vpop.permute.xlu0 %278 }
 0x109   : > { %v275_v13 = vpop.permute.xlu1 %274  ;;  %v751_v14 = vld [vmem:[#allocation2 + $0x88] sm:$0xff]  ;;  %v282_v15 = vsel %vm280_vm13, %v277_v9, %v279_v12  ;;  %288 = vst.msk [vmem:[#allocation2 + $0x70] sm:$0xff] %vm203_vm0, %v279_v12 }
 0x10a   : > { %v281_v16 = vsel %vm280_vm13, %v275_v13, %v277_v9  ;;  %906 = vmatpush1.msra.mxu1 %v751_v14  ;;  %836 = vmatprep.subr.mxu0 %v282_v15 }
 0x10b   : > { %907 = vmatprep.subr.mxu1 %v1344_v0  ;;  %837 = vmatpush1.msra.mxu0 %v281_v16 }
 0x10c   : > { %v256_v18 = vpop.permute.xlu0 %255 }
 0x10d   : > { %v258_v17 = vpop.permute.xlu1 %257 }
 0x10e   : > { %267 = vst.msk [vmem:[#allocation2 + $0x58] sm:$0xff] %vm203_vm0, %v258_v17  ;;  %v261_v19 = vsel %vm259_vm14, %v256_v18, %v258_v17 }
 0x10f   : > { %838 = vmatprep.subr.mxu0 %v261_v19 }
 0x110   : > { %v254_v20 = vpop.permute.xlu0 %253  ;;  %v748_v22 = vld [vmem:[#allocation2 + $0x70] sm:$0xff] }
 0x111   : > { %v235_v21 = vpop.permute.xlu1 %234  ;;  %v260_v23 = vsel %vm259_vm14, %v254_v20, %v256_v18  ;;  %908 = vmatpush1.msra.mxu1 %v748_v22 }
 0x112   : > { %909 = vmatprep.subr.mxu1 %v1344_v0  ;;  %839 = vmatpush1.msra.mxu0 %v260_v23 }
 0x114   : > { %v237_v24 = vpop.permute.xlu0 %236 }
 0x115   : > { %v233_v25 = vpop.permute.xlu1 %232  ;;  %v745_v26 = vld [vmem:[#allocation2 + $0x58] sm:$0xff]  ;;  %v240_v27 = vsel %vm238_vm15, %v235_v21, %v237_v24  ;;  %246 = vst.msk [vmem:[#allocation2 + $0x40] sm:$0xff] %vm203_vm0, %v237_v24 }
 0x116   : > { %v239_v28 = vsel %vm238_vm15, %v233_v25, %v235_v21  ;;  %910 = vmatpush1.msra.mxu1 %v745_v26  ;;  %840 = vmatprep.subr.mxu0 %v240_v27 }
 0x117   : > { %911 = vmatprep.subr.mxu1 %v1344_v0  ;;  %841 = vmatpush1.msra.mxu0 %v239_v28 }
 0x118   : > { %v214_v31 = vpop.permute.xlu0 %213 }
 0x119   : > { %v216_v29 = vpop.permute.xlu1 %215 }
 0x11a   : > { %225 = vst.msk [vmem:[#allocation2 + $0x28] sm:$0xff] %vm203_vm0, %v216_v29  ;;  %v219_v32 = vsel %vm217_vm1, %v214_v31, %v216_v29 }
 0x11b   : > { %842 = vmatprep.subr.mxu0 %v219_v32 }
 0x11c   : > { %v212_v34 = vpop.permute.xlu0 %211  ;;  %v742_v35 = vld [vmem:[#allocation2 + $0x40] sm:$0xff] }
 0x11d   : > { %v718_v33 = vpop.permute.xlu1 %717  ;;  %v218_v36 = vsel %vm217_vm1, %v212_v34, %v214_v31  ;;  %912 = vmatpush1.msra.mxu1 %v742_v35 }
 0x11e   : > { %913 = vmatprep.subr.mxu1 %v1344_v0  ;;  %843 = vmatpush1.msra.mxu0 %v218_v36 }
 0x11f   : > { %844 = vmatprep.subr.mxu0 %v1545_v1 }
 0x120   : > { %v720_v38 = vpop.permute.xlu0 %719  ;;  %845 = vmatpush1.msra.mxu0 %v1548_v2 }
 0x121   : > { %v716_v37 = vpop.permute.xlu1 %715  ;;  %v739_v39 = vld [vmem:[#allocation2 + $0x28] sm:$0xff]  ;;  %v725_v42 = vsel %vm723_vm2, %v718_v33, %v720_v38 }
 0x122   : > { %v724_v41 = vsel %vm723_vm2, %v716_v37, %v718_v33  ;;  %914 = vmatpush1.msra.mxu1 %v739_v39  ;;  %860 = vmatprep.subr.mxu0 %v725_v42 }
 0x123   : > { %915 = vmatprep.subr.mxu1 %v1344_v0  ;;  %861 = vmatpush2.msra.mxu0 %v724_v41 }
 0x124   : > { %916 = vmatpush1.msra.mxu1 %v736_v40  ;;  %v692_v44 = vpop.permute.xlu0 %691 }
 0x125   : > { %v694_v43 = vpop.permute.xlu1 %693  ;;  %931 = vmatprep.subr.mxu1 %v1344_v0 }
 0x126   : > { %v699_v1 = vsel %vm697_vm3, %v692_v44, %v694_v43 }
 0x127   : > { %862 = vmatprep.subr.mxu0 %v699_v1 }
 0x128   : > { %v690_v45 = vpop.permute.xlu0 %689 }
 0x129   : > { %v666_v2 = vpop.permute.xlu1 %665  ;;  %v698_v46 = vsel %vm697_vm3, %v690_v45, %v692_v44 }
 0x12a   : > { %863 = vmatpush2.msra.mxu0 %v698_v46 }
 0x12c   : > { %v668_v48 = vpop.permute.xlu0 %667 }
 0x12d   : > { %v664_v47 = vpop.permute.xlu1 %663  ;;  %v673_v50 = vsel %vm671_vm4, %v666_v2, %v668_v48 }
 0x12e   : > { %v672_v49 = vsel %vm671_vm4, %v664_v47, %v666_v2  ;;  %864 = vmatprep.subr.mxu0 %v673_v50 }
 0x12f   : > { %865 = vmatpush2.msra.mxu0 %v672_v49 }
 0x130   : > { %v722_v52 = vpop.permute.xlu0 %721 }
 0x131   : > { %v640_v51 = vpop.permute.xlu1 %639  ;;  %v726_v53 = vsel %vm723_vm2, %v720_v38, %v722_v52 }
 0x132   : > { %732 = vst.msk [vmem:[#allocation2 + $0x250] sm:$0xff] %vm203_vm0, %v726_v53 }
 0x134   : > { %v642_v55 = vpop.permute.xlu0 %641 }
 0x135   : > { %v638_v54 = vpop.permute.xlu1 %637  ;;  %v647_v57 = vsel %vm645_vm5, %v640_v51, %v642_v55 }
 0x136   : > { %v646_v56 = vsel %vm645_vm5, %v638_v54, %v640_v51  ;;  %866 = vmatprep.subr.mxu0 %v647_v57 }
 0x137   : > { %867 = vmatpush2.msra.mxu0 %v646_v56 }
 0x138   : > { %v696_v59 = vpop.permute.xlu0 %695 }
 0x139   : > { %v614_v58 = vpop.permute.xlu1 %613  ;;  %v700_v60 = vsel %vm697_vm3, %v694_v43, %v696_v59  ;;  %v808_v61 = vld [vmem:[#allocation2 + $0x250] sm:$0xff] }
 0x13a   : > { %706 = vst.msk [vmem:[#allocation2 + $0x238] sm:$0xff] %vm203_vm0, %v700_v60  ;;  %932 = vmatpush2.msra.mxu1 %v808_v61 }
 0x13b   : > { %933 = vmatprep.subr.mxu1 %v1344_v0 }
 0x13c   : > { %v616_v63 = vpop.permute.xlu0 %615 }
 0x13d   : > { %v612_v62 = vpop.permute.xlu1 %611  ;;  %v621_v4 = vsel %vm619_vm6, %v614_v58, %v616_v63 }
 0x13e   : > { %v620_v3 = vsel %vm619_vm6, %v612_v62, %v614_v58  ;;  %868 = vmatprep.subr.mxu0 %v621_v4 }
 0x13f   : > { %869 = vmatpush2.msra.mxu0 %v620_v3 }
 0x140   : > { %v670_v6 = vpop.permute.xlu0 %669 }
 0x141   : > { %v592_v5 = vpop.permute.xlu1 %591  ;;  %v674_v7 = vsel %vm671_vm4, %v668_v48, %v670_v6  ;;  %v805_v8 = vld [vmem:[#allocation2 + $0x238] sm:$0xff] }
 0x142   : > { %680 = vst.msk [vmem:[#allocation2 + $0x220] sm:$0xff] %vm203_vm0, %v674_v7  ;;  %934 = vmatpush2.msra.mxu1 %v805_v8 }
 0x143   : > { %935 = vmatprep.subr.mxu1 %v1344_v0 }
 0x144   : > { %v594_v10 = vpop.permute.xlu0 %593 }
 0x145   : > { %v590_v9 = vpop.permute.xlu1 %589  ;;  %v596_v12 = vsel %vm203_vm0, %v592_v5, %v594_v10  ;;  %602 = vst.msk [vmem:[#allocation2 + $0x1d8] sm:$0xff] %vm203_vm0, %v594_v10 }
 0x146   : > { %v595_v11 = vsel %vm203_vm0, %v590_v9, %v592_v5  ;;  %870 = vmatprep.subr.mxu0 %v596_v12 }
 0x147   : > { %871 = vmatpush2.msra.mxu0 %v595_v11 }
 0x148   : > { %v644_v14 = vpop.permute.xlu0 %643 }
 0x149   : > { %v571_v13 = vpop.permute.xlu1 %570  ;;  %v648_v15 = vsel %vm645_vm5, %v642_v55, %v644_v14  ;;  %v802_v16 = vld [vmem:[#allocation2 + $0x220] sm:$0xff] }
 0x14a   : > { %654 = vst.msk [vmem:[#allocation2 + $0x208] sm:$0xff] %vm203_vm0, %v648_v15  ;;  %936 = vmatpush2.msra.mxu1 %v802_v16 }
 0x14b   : > { %937 = vmatprep.subr.mxu1 %v1344_v0 }
 0x14c   : > { %v573_v18 = vpop.permute.xlu0 %572  ;;  %v793_v34 = vld [vmem:[#allocation2 + $0x1d8] sm:$0xff] }
 0x14d   : > { %v569_v17 = vpop.permute.xlu1 %568  ;;  %v576_v20 = vsel %vm574_vm7, %v571_v13, %v573_v18  ;;  %582 = vst.msk [vmem:[#allocation2 + $0x1c0] sm:$0xff] %vm203_vm0, %v573_v18 }
 0x14e   : > { %v575_v19 = vsel %vm574_vm7, %v569_v17, %v571_v13  ;;  %872 = vmatprep.subr.mxu0 %v576_v20 }
 0x14f   : > { %873 = vmatpush2.msra.mxu0 %v575_v19 }
 0x150   : > { %v618_v22 = vpop.permute.xlu0 %617 }
 0x151   : > { %v550_v21 = vpop.permute.xlu1 %549  ;;  %v622_v23 = vsel %vm619_vm6, %v616_v63, %v618_v22  ;;  %v799_v24 = vld [vmem:[#allocation2 + $0x208] sm:$0xff] }
 0x152   : > { %628 = vst.msk [vmem:[#allocation2 + $0x1f0] sm:$0xff] %vm203_vm0, %v622_v23  ;;  %938 = vmatpush2.msra.mxu1 %v799_v24 }
 0x153   : > { %939 = vmatprep.subr.mxu1 %v1344_v0 }
 0x154   : > { %v552_v26 = vpop.permute.xlu0 %551  ;;  %v790_v37 = vld [vmem:[#allocation2 + $0x1c0] sm:$0xff] }
 0x155   : > { %v548_v25 = vpop.permute.xlu1 %547  ;;  %v555_v28 = vsel %vm553_vm8, %v550_v21, %v552_v26  ;;  %561 = vst.msk [vmem:[#allocation2 + $0x1a8] sm:$0xff] %vm203_vm0, %v552_v26 }
 0x156   : > { %v554_v27 = vsel %vm553_vm8, %v548_v25, %v550_v21  ;;  %874 = vmatprep.subr.mxu0 %v555_v28 }
 0x157   : > { %875 = vmatpush2.msra.mxu0 %v554_v27 }
 0x158   : > { %v529_v31 = vpop.permute.xlu0 %528 }
 0x159   : > { %v531_v29 = vpop.permute.xlu1 %530  ;;  %v796_v33 = vld [vmem:[#allocation2 + $0x1f0] sm:$0xff] }
 0x15a   : > { %540 = vst.msk [vmem:[#allocation2 + $0x190] sm:$0xff] %vm203_vm0, %v531_v29  ;;  %v534_v32 = vsel %vm532_vm9, %v529_v31, %v531_v29  ;;  %940 = vmatpush2.msra.mxu1 %v796_v33 }
 0x15b   : > { %876 = vmatprep.subr.mxu0 %v534_v32  ;;  %941 = vmatprep.subr.mxu1 %v1344_v0 }
 0x15c   : > { %v527_v35 = vpop.permute.xlu0 %526  ;;  %942 = vmatpush2.msra.mxu1 %v793_v34  ;;  %v787_v38 = vld [vmem:[#allocation2 + $0x1a8] sm:$0xff] }
 0x15d   : > { %v533_v36 = vsel %vm532_vm9, %v527_v35, %v529_v31  ;;  %943 = vmatprep.subr.mxu1 %v1344_v0 }
 0x15e   : > { %944 = vmatpush2.msra.mxu1 %v790_v37  ;;  %877 = vmatpush2.msra.mxu0 %v533_v36 }
 0x15f   : > { %945 = vmatprep.subr.mxu1 %v1344_v0  ;;  %879 = vmatmul.mubr.f32.vlgmr.msra.gmra.mxu0 %v1649_v30 }
 0x160   : > { %946 = vmatpush2.msra.mxu1 %v787_v38 }
 0x161   : > { %v784_v39 = vld [vmem:[#allocation2 + $0x190] sm:$0xff]  ;;  %947 = vmatprep.subr.mxu1 %v1344_v0 }
 0x162   : > { %948 = vmatpush2.msra.mxu1 %v784_v39 }
 0x163   : > { %950 = vmatmul.mubr.f32.vlgmr.msra.gmra.mxu1 %v1649_v30 }
 0x21f   : > { %v880_v40 = vpop.f32.mrf.mxu0 }
 0x220   : > { %v955_v41 = vmin.f32 %v880_v40, 20.0  ;;  %vm982_vm0 = vcmp.gt.f32.partialorder %v880_v40, 20.0 }
 0x221   : > { %v882_v42 = vpop.f32.mrf.mxu0 }
 0x222   : > { %v958_v43 = vmul.f32 1.442695, %v955_v41  ;;  %v956_v44 = vmin.f32 %v882_v42, 20.0  ;;  %vm983_vm10 = vcmp.gt.f32.partialorder %v882_v42, 20.0 }
 0x223   : > { %v951_v1 = vpop.f32.mrf.mxu1 }
 0x224   : > { %v957_v2 = vmin.f32 %v951_v1, 20.0  ;;  %1204 = vpow2.f32 %v958_v43  ;;  %v960_v45 = vmul.f32 1.442695, %v956_v44  ;;  %vm984_vm12 = vcmp.gt.f32.partialorder %v951_v1, 20.0 }
 0x225   : > { %v953_v46 = vpop.f32.mrf.mxu1 }
 0x226   : > { %v962_v47 = vmul.f32 1.442695, %v957_v2  ;;  %1206 = vpow2.f32 %v960_v45 }
 0x228   : > { %1208 = vpow2.f32 %v962_v47 }
 0x231   : > { %v1205_v48 = vpop.eup %1204 }
 0x232   : > { %v964_v49 = vadd.f32 1.0, %v1205_v48 }
 0x233   : > { %v1207_v0 = vpop.eup %1206 }
 0x234   : > { %v967_v50 = vmul.f32 %v964_v49, %v964_v49  ;;  %v965_v51 = vadd.f32 1.0, %v1207_v0 }
 0x235   : > { %v1209_v30 = vpop.eup %1208 }
 0x236   : > { %v966_v52 = vadd.f32 1.0, %v1209_v30  ;;  %v970_v53 = vadd.f32 1.0, %v967_v50  ;;  %v968_v54 = vmul.f32 %v965_v51, %v965_v51 }
 0x238   : > { %v969_v55 = vmul.f32 %v966_v52, %v966_v52  ;;  %1210 = vrcp.f32 %v970_v53  ;;  %v971_v56 = vadd.f32 1.0, %v968_v54 }
 0x23a   : > { %v972_v57 = vadd.f32 1.0, %v969_v55  ;;  %1212 = vrcp.f32 %v971_v56 }
 0x23c   : > { %1214 = vrcp.f32 %v972_v57 }
 0x245   : > { %v1211_v58 = vpop.eup %1210 }
 0x246   : > { %v976_v59 = vmul.f32 2.0, %v1211_v58 }
 0x247   : > { %v1213_v60 = vpop.eup %1212 }
 0x248   : > { %v979_v61 = vsub.f32 1.0, %v976_v59  ;;  %v977_v62 = vmul.f32 2.0, %v1213_v60 }
 0x249   : > { %v1215_v63 = vpop.eup %1214 }
 0x24a   : > { %v978_v3 = vmul.f32 2.0, %v1215_v63  ;;  %v985_v4 = vmul.f32 %v979_v61, %v880_v40  ;;  %v980_v5 = vsub.f32 1.0, %v977_v62 }
 0x24c   : > { %v981_v6 = vsub.f32 1.0, %v978_v3  ;;  %v986_v7 = vmul.f32 %v980_v5, %v882_v42  ;;  %v988_v9 = vsel %vm982_vm0, %v880_v40, %v985_v4 }
 0x24e   : > { %v987_v8 = vmul.f32 %v981_v6, %v951_v1  ;;  %v989_v10 = vsel %vm983_vm10, %v882_v42, %v986_v7 }
 0x24f   : > { %v993_v11 = vcombine.low %v988_v9, %v989_v10 }
 0x250   : > { %v990_v12 = vsel %vm984_vm12, %v951_v1, %v987_v8 }
 0x251   : > { %995 = vst [vmem:[%s197_s25] sm:$0xff] %v993_v11  ;;  %997 = vst.msk [vmem:[%s197_s25 + $0x8] sm:$0xf] %vm996_vm11, %v990_v12 }
 0x252   : > { %1285 = shalt.err (!%p1282_p5)
}
 0x253   : > { %s1286_s20 = scalar_lea.hbm %s1730_s6, 192  ;;  %s1290_s4 = scalar_lea.hbm %s1775_s2, 384 }
 0x254   : > { %p1287_p9 = scmp.ne.s32.totalorder %s1730_s6, %s1286_s20  ;;  %p1291_p12 = scmp.lt.s32.totalorder %s1730_s6, %s1775_s2 }
 0x255   : > { %p1292_p1 = scmp.lt.s32.totalorder %s1290_s4, %s1286_s20 }
 0x256   : > { %p1288_p0 = pnand %p1287_p9, %p1788_p13 }
 0x257   : > { %p1293_p3 = por %p1292_p1, %p1291_p12 }
 0x258   : > { %p1289_p11 = pneg %p1288_p0 }
 0x25a   : > { %p1294_p6 = pnand %p1293_p3, %p1289_p11 }
 0x25c   : > { %1297 = shalt.err (!%p1294_p6)
}
 0x25d   : > { %1131 = dma.vmem_to_hbm [thread:$0]  (%p1788_p13), %s1732_s23, 192, %s1730_s6, %s999_s13  }
 0x25e PF: > { %s1025_s17 = sand.u32 1, %s1328_s9   ;;  %p1789_p7 = scmp.ne.s32.totalorder %s1781_s22, 0 }
 0x25f   : > { %p1790_p8 = scmp.ge.s32.totalorder %s1340_s12, 2  ;;  %s1026_s7 = scalar_lea.sflag [#allocation5], %s1025_s17 }
 0x261   : > { %p1141_p10 = pnand %p1790_p8, %p1789_p7 }
 0x263   : > { %p1142_p2 = pneg %p1141_p10 }
 0x265   : > { %1323 = dma.done.wait (%p1142_p2), %s1026_s7, 192  }
 0x266   : > { %1325 = vsyncadd (%p1142_p2), %s1026_s7, 4294967104  ;;  %p18_p4 = scmp.ge.s32.totalorder %s1410_s15, 4   ;;  %s1791_s9 = smov %s1332_s10 }
 0x267   : > { %s1792_s10 = smov %s1336_s11  ;;  %s1793_s11 = smov %s1422_s18 }
 0x268   : > { %s1794_s12 = smov %s1410_s15  ;;  %20 = sbr.rel (!%p18_p4) target bundleno = 7 (0x7), region = 86 }
 0x26d   :  { %1031 = vsyncpa [#allocation4], 1 }
 0x26e   :  { %1033 = vsyncpa [#allocation4 + $0x1], 1 }
 0x26f   :  { %1034 = vsyncpa [#allocation7], 1 }
 0x270   :  { %1036 = vsyncpa [#allocation7 + $0x1], 1 }
 0x271   :  { %1037 = vsyncpa [#allocation5], 1 }
 0x272   :  { %1039 = vsyncpa [#allocation5 + $0x1], 1 }

</bundles_post_ra>
